<compile_context>
chip_gen: v5e
topology: v5e:2x2
jax: 0.10.0
libtpu: 0.0.40
codegen_flags: <defaults>
</compile_context>

<pallas_src>
import jax
import jax.numpy as jnp
import numpy as np
from jax.experimental import pallas as pl
from jax.experimental.pallas import tpu as pltpu

A, B, C, E, F = 8, 16, 32, 16, 32
K = B + E + A            # 40  : fused contraction dim of lhs = [x1 | x3 | x5]
V = C + F + B + C        # 112 : width of v = [m1 | m2 | m3 | m1]


def _cat_mm_kernel(x1_ref, x2_ref, x3_ref, x4_ref, x5_ref, out_ref, lhs_s, rhs_s):
    x1 = x1_ref[...]
    x2 = x2_ref[...]

    # ---- Pack lhs = [x1 | x3 | x5] : (A, K), entirely in VMEM scratch ----
    lhs_s[:, 0:B] = x1
    lhs_s[:, B:B + E] = x3_ref[...]
    lhs_s[:, B + E:K] = x5_ref[...]

    # ---- Block-structured rhs : (K, V) so ONE MXU push yields v = [m1|m2|m3|m1] ----
    rhs_s[...] = jnp.zeros_like(rhs_s)
    rhs_s[0:B, 0:C] = x2                            # m1 = x1 @ x2
    rhs_s[B:B + E, C:C + F] = x4_ref[...]           # m2 = x3 @ x4
    rhs_s[B + E:K, C + F:C + F + B] = x1            # m3 = x5 @ x1
    rhs_s[0:B, C + F + B:V] = x2                    # repeated m1 block

    v = jnp.dot(lhs_s[...], rhs_s[...], preferred_element_type=jnp.float32)

    # ---- out = [v | v]: duplicate via two in-kernel stores (no wrapper concat) ----
    v = v.astype(out_ref.dtype)
    out_ref[:, 0:V] = v
    out_ref[:, V:2 * V] = v


def cat_mm(x1, x2, x3, x4, x5):
    vmem = pl.BlockSpec(memory_space=pltpu.MemorySpace.VMEM)
    return pl.pallas_call(
        _cat_mm_kernel,
        out_shape=jax.ShapeDtypeStruct((A, 2 * V), jnp.float32),
        in_specs=[vmem, vmem, vmem, vmem, vmem],
        out_specs=vmem,
        scratch_shapes=[
            pltpu.VMEM((A, K), jnp.float32),   # packed lhs
            pltpu.VMEM((K, V), jnp.float32),   # block-structured rhs
        ],
        cost_estimate=pl.CostEstimate(
            flops=2 * A * K * V,
            transcendentals=0,
            bytes_accessed=4 * (A * B + B * C + A * E + E * F + A * A + A * 2 * V),
        ),
    )(x1, x2, x3, x4, x5)


cat_mm_jit = jax.jit(cat_mm)


def reference(x1, x2, x3, x4, x5):
    v = jnp.concatenate([x1 @ x2, x3 @ x4, x5 @ x1, x1 @ x2], axis=1)
    return jnp.concatenate([v, v], axis=1)


if __name__ == "__main__":
    key = jax.random.PRNGKey(0)
    k1, k2, k3, k4, k5 = jax.random.split(key, 5)
    x1 = jax.random.normal(k1, (A, B), dtype=jnp.float32)
    x2 = jax.random.normal(k2, (B, C), dtype=jnp.float32)
    x3 = jax.random.normal(k3, (A, E), dtype=jnp.float32)
    x4 = jax.random.normal(k4, (E, F), dtype=jnp.float32)
    x5 = jax.random.normal(k5, (A, A), dtype=jnp.float32)

    out = cat_mm_jit(x1, x2, x3, x4, x5)
    jax.block_until_ready(out)

    ref = reference(x1, x2, x3, x4, x5)
    np.testing.assert_allclose(np.asarray(out), np.asarray(ref), rtol=1e-5, atol=1e-5)
    print("KERNEL_OK")
</pallas_src>

<mosaic_0001>
module attributes {stable_mosaic.version = 11 : i64} {
  func.func @_cat_mm_kernel(%arg0: memref<8x16xf32, #tpu.memory_space<vmem>>, %arg1: memref<16x32xf32, #tpu.memory_space<vmem>>, %arg2: memref<8x16xf32, #tpu.memory_space<vmem>>, %arg3: memref<16x32xf32, #tpu.memory_space<vmem>>, %arg4: memref<8x8xf32, #tpu.memory_space<vmem>>, %arg5: memref<8x224xf32, #tpu.memory_space<vmem>>, %arg6: memref<8x40xf32, #tpu.memory_space<vmem>>, %arg7: memref<40x112xf32, #tpu.memory_space<vmem>>) attributes {dimension_semantics = [], scalar_prefetch = 0 : i64, scratch_operands = 2 : i64, tpu.core_type = #tpu.core_type<tc>} {
    %c0 = arith.constant 0 : index
    %c0_0 = arith.constant 0 : index
    %0 = vector.load %arg0[%c0, %c0_0] : memref<8x16xf32, #tpu.memory_space<vmem>>, vector<8x16xf32>
    %c0_1 = arith.constant 0 : index
    %c0_2 = arith.constant 0 : index
    %1 = vector.load %arg1[%c0_1, %c0_2] : memref<16x32xf32, #tpu.memory_space<vmem>>, vector<16x32xf32>
    %c0_3 = arith.constant 0 : index
    %c0_4 = arith.constant 0 : index
    %2 = vector.load %arg6[%c0_3, %c0_4] : memref<8x40xf32, #tpu.memory_space<vmem>>, vector<8x16xf32>
    tpu.vector_store %arg6[%c0_3, %c0_4], %0 {strides = array<i32>} : memref<8x40xf32, #tpu.memory_space<vmem>>, vector<8x16xf32>,
    %c0_5 = arith.constant 0 : index
    %c0_6 = arith.constant 0 : index
    %3 = vector.load %arg2[%c0_5, %c0_6] : memref<8x16xf32, #tpu.memory_space<vmem>>, vector<8x16xf32>
    %c0_7 = arith.constant 0 : index
    %c16 = arith.constant 16 : index
    %4 = vector.load %arg6[%c0_7, %c16] : memref<8x40xf32, #tpu.memory_space<vmem>>, vector<8x16xf32>
    tpu.vector_store %arg6[%c0_7, %c16], %3 {strides = array<i32>} : memref<8x40xf32, #tpu.memory_space<vmem>>, vector<8x16xf32>,
    %c0_8 = arith.constant 0 : index
    %c0_9 = arith.constant 0 : index
    %5 = vector.load %arg4[%c0_8, %c0_9] : memref<8x8xf32, #tpu.memory_space<vmem>>, vector<8x8xf32>
    %c0_10 = arith.constant 0 : index
    %c32 = arith.constant 32 : index
    %6 = vector.load %arg6[%c0_10, %c32] : memref<8x40xf32, #tpu.memory_space<vmem>>, vector<8x8xf32>
    tpu.vector_store %arg6[%c0_10, %c32], %5 {strides = array<i32>} : memref<8x40xf32, #tpu.memory_space<vmem>>, vector<8x8xf32>,
    %cst = arith.constant 0.000000e+00 : f32
    %7 = vector.broadcast %cst : f32 to vector<40x112xf32>
    %c0_11 = arith.constant 0 : index
    %c0_12 = arith.constant 0 : index
    %8 = vector.load %arg7[%c0_11, %c0_12] : memref<40x112xf32, #tpu.memory_space<vmem>>, vector<40x112xf32>
    tpu.vector_store %arg7[%c0_11, %c0_12], %7 {strides = array<i32>} : memref<40x112xf32, #tpu.memory_space<vmem>>, vector<40x112xf32>,
    %c0_13 = arith.constant 0 : index
    %c0_14 = arith.constant 0 : index
    %9 = vector.load %arg7[%c0_13, %c0_14] : memref<40x112xf32, #tpu.memory_space<vmem>>, vector<16x32xf32>
    tpu.vector_store %arg7[%c0_13, %c0_14], %1 {strides = array<i32>} : memref<40x112xf32, #tpu.memory_space<vmem>>, vector<16x32xf32>,
    %c0_15 = arith.constant 0 : index
    %c0_16 = arith.constant 0 : index
    %10 = vector.load %arg3[%c0_15, %c0_16] : memref<16x32xf32, #tpu.memory_space<vmem>>, vector<16x32xf32>
    %c16_17 = arith.constant 16 : index
    %c32_18 = arith.constant 32 : index
    %11 = vector.load %arg7[%c16_17, %c32_18] : memref<40x112xf32, #tpu.memory_space<vmem>>, vector<16x32xf32>
    tpu.vector_store %arg7[%c16_17, %c32_18], %10 {strides = array<i32>} : memref<40x112xf32, #tpu.memory_space<vmem>>, vector<16x32xf32>,
    %c32_19 = arith.constant 32 : index
    %c64 = arith.constant 64 : index
    %12 = vector.load %arg7[%c32_19, %c64] : memref<40x112xf32, #tpu.memory_space<vmem>>, vector<8x16xf32>
    tpu.vector_store %arg7[%c32_19, %c64], %0 {strides = array<i32>} : memref<40x112xf32, #tpu.memory_space<vmem>>, vector<8x16xf32>,
    %c0_20 = arith.constant 0 : index
    %c80 = arith.constant 80 : index
    %13 = vector.load %arg7[%c0_20, %c80] : memref<40x112xf32, #tpu.memory_space<vmem>>, vector<16x32xf32>
    tpu.vector_store %arg7[%c0_20, %c80], %1 {strides = array<i32>} : memref<40x112xf32, #tpu.memory_space<vmem>>, vector<16x32xf32>,
    %c0_21 = arith.constant 0 : index
    %c0_22 = arith.constant 0 : index
    %14 = vector.load %arg6[%c0_21, %c0_22] : memref<8x40xf32, #tpu.memory_space<vmem>>, vector<8x40xf32>
    %c0_23 = arith.constant 0 : index
    %c0_24 = arith.constant 0 : index
    %15 = vector.load %arg7[%c0_23, %c0_24] : memref<40x112xf32, #tpu.memory_space<vmem>>, vector<40x112xf32>
    %cst_25 = arith.constant dense<0.000000e+00> : vector<8x112xf32>
    %16 = tpu.matmul %14, %15, %cst_25 {dimension_numbers = #tpu.dot_dimension_numbers<[1], [0], [0], [1], [0, 0, 1, 1], [], []>} : vector<8x40xf32>, vector<40x112xf32>, vector<8x112xf32> -> vector<8x112xf32>
    %c0_26 = arith.constant 0 : index
    %c0_27 = arith.constant 0 : index
    %17 = vector.load %arg5[%c0_26, %c0_27] : memref<8x224xf32, #tpu.memory_space<vmem>>, vector<8x112xf32>
    tpu.vector_store %arg5[%c0_26, %c0_27], %16 {strides = array<i32>} : memref<8x224xf32, #tpu.memory_space<vmem>>, vector<8x112xf32>,
    %c0_28 = arith.constant 0 : index
    %c112 = arith.constant 112 : index
    %18 = vector.load %arg5[%c0_28, %c112] : memref<8x224xf32, #tpu.memory_space<vmem>>, vector<8x112xf32>
    tpu.vector_store %arg5[%c0_28, %c112], %16 {strides = array<i32>} : memref<8x224xf32, #tpu.memory_space<vmem>>, vector<8x112xf32>,
    return
  }
}

</mosaic_0001>

<bundles_post_ra>
// kernel: cat_mm.1
= control target key start
LH: loop header
LB: loop body
LE: loop exit
PB: predicated region body
PF: predicated region fallthrough
CT: control target
= control target key end

     0   :  { %10 = vsyncpa [#allocation5], 0  ;;  %s444_s0 = inlined_call_operand.hbm [shape: f32[8,16], index: 0, kind: input, shape index: {}]   ;;  %s445_s1 = inlined_call_operand.hbm [shape: f32[16,32], index: 1, kind: input, shape index: {}]   ;;  %s446_s2 = inlined_call_operand.hbm [shape: f32[8,16], index: 2, kind: input, shape index: {}]   ;;  %s447_s3 = inlined_call_operand.hbm [shape: f32[16,32], index: 3, kind: input, shape index: {}]   ;;  %s448_s4 = inlined_call_operand.hbm [shape: f32[8,8], index: 4, kind: input, shape index: {}]   ;;  %s449_s5 = inlined_call_operand.hbm [shape: f32[8,224], index: 5, kind: output, shape index: {}]  }
   0x1   :  { %11 = vsyncpa [#allocation8], 0 }
   0x2   :  { %12 = vsyncpa [#allocation11], 0  ;;  %s29_s20 = sshll.u32 %s445_s1, 4  ;;  %s30_s20 = int_to_ptr.hbm [resolvable:$true] %s29_s20 }
   0x3   :  { %13 = vsyncpa [#allocation6], 0  ;;  %s376_s21 = smov [#allocation7]   ;;  %s53_s25 = sshll.u32 %s447_s3, 4  ;;  %s54_s25 = int_to_ptr.hbm [resolvable:$true] %s53_s25 }
   0x4   :  { %s31_s22 = sshll.u32 %s376_s21, 4  ;;  %s377_s26 = smov 128   ;;  %s32_s22 = int_to_ptr.vmem [resolvable:$true] %s31_s22 }
   0x5   :  { %s378_s27 = smov 8   ;;  %s379_s28 = smov [#allocation10]  }
   0x6   :  { %37 = dma.hbm_to_vmem [thread:$0]  %s30_s20, 256, %s32_s22, [#allocation8], %s377_s26, %s377_s26, %s378_s27  }
   0x7   :  { %s55_s29 = sshll.u32 %s379_s28, 4  ;;  %s19_s7 = sshll.u32 %s444_s0, 4  ;;  %s56_s29 = int_to_ptr.vmem [resolvable:$true] %s55_s29  ;;  %s20_s7 = int_to_ptr.hbm [resolvable:$true] %s19_s7 }
   0x8   :  { %61 = dma.hbm_to_vmem [thread:$0]  %s54_s25, 256, %s56_s29, [#allocation11], %s377_s26, %s377_s26, %s378_s27  }
   0x9   :  { %s43_s9 = sshll.u32 %s446_s2, 4  ;;  %s380_s10 = smov [#allocation4]   ;;  %s44_s9 = int_to_ptr.hbm [resolvable:$true] %s43_s9 }
   0xa   :  { %s21_s11 = sshll.u32 %s380_s10, 4  ;;  %s381_s3 = smov [#allocation9]   ;;  %s22_s11 = int_to_ptr.vmem [resolvable:$true] %s21_s11 }
   0xb   :  { %24 = dma.hbm_to_vmem [thread:$0]  %s20_s7, 128, %s22_s11, [#allocation5]  }
   0xc   :  { %s45_s12 = sshll.u32 %s381_s3, 4  ;;  %s67_s15 = sshll.u32 %s448_s4, 4  ;;  %s46_s12 = int_to_ptr.vmem [resolvable:$true] %s45_s12  ;;  %s68_s15 = int_to_ptr.hbm [resolvable:$true] %s67_s15 }
   0xd   :  { %48 = dma.hbm_to_vmem [thread:$0]  %s44_s9, 128, %s46_s12, [#allocation8]  }
   0xe   :  { %s382_s0 = smov [#allocation12]  }
   0xf   :  { %s69_s16 = sshll.u32 %s382_s0, 4  ;;  %s70_s16 = int_to_ptr.vmem [resolvable:$true] %s69_s16 }
  0x10   :  { %72 = dma.hbm_to_vmem [thread:$0]  %s68_s15, 128, %s70_s16, [#allocation11]  }
  0x11   :  { %368 = dma.done.wait [#allocation5], 128  }
  0x12   :  { %369 = vsyncadd [#allocation5], 4294967168 }
  0x13   :  { %370 = dma.done.wait [#allocation8], 384  }
  0x14   :  { %371 = vsyncadd [#allocation8], 4294966912 }
  0x15   :  { %372 = dma.done.wait [#allocation11], 384  }
  0x16   :  { %373 = vsyncadd [#allocation11], 4294966912  ;;  %vm112_vm0 = vcmask 916480   ;;  %v383_v0 = vmov 0.0   ;;  %vm96_vm1 = vcmask 130048   ;;  %vm118_vm2 = vcmask 261120  }
  0x17   :  { %114 = vst.msk [vmem:[#allocation3 + $0x8] sm:$0xff] %vm112_vm0, %v383_v0  ;;  %v93_v1 = vld [vmem:[#allocation4] sm:$0xff]  ;;  %s384_s2 = smov 64   ;;  %s385_s4 = smov 32   ;;  %v95_v3 = vld [vmem:[#allocation7 + $0x8] sm:$0xff]  ;;  %v98_v4 = vld [vmem:[#allocation9] sm:$0xff] }
  0x18   :  { %113 = vst.msk [vmem:[#allocation3] sm:$0xff] %vm112_vm0, %v383_v0  ;;  %v121_v2 = vld [vmem:[#allocation10] sm:$0xff]  ;;  %135 = vrot.lane.b32.xlu0 %v93_v1, %s384_s2  ;;  %s386_s17 = smov 16   ;;  %v94_v5 = vld [vmem:[#allocation7] sm:$0xff]  ;;  %s387_s18 = smov 80   ;;  %v105_v7 = vld [vmem:[#allocation12] sm:$0xff] }
  0x19   :  { %115 = vst.msk [vmem:[#allocation3 + $0x10] sm:$0xff] %vm112_vm0, %v383_v0  ;;  %125 = vrot.lane.b32.xlu1 %v121_v2, %s385_s4  ;;  %100 = vrot.lane.b32.xlu2 %v98_v4, %s386_s17  ;;  %v122_v6 = vld [vmem:[#allocation10 + $0x8] sm:$0xff]  ;;  %vm103_vm3 = vcmask 261248   ;;  %vm148_vm4 = vcmask 917120   ;;  %vm138_vm5 = vcmask 654848   ;;  %vm131_vm6 = vcmask 523520  }
  0x1a   :  { %116 = vst.msk [vmem:[#allocation3 + $0x18] sm:$0xff] %vm112_vm0, %v383_v0  ;;  %vm110_vm7 = vcmask 326912   ;;  %vm157_vm8 = vcmask 326656   ;;  %s388_s19 = smov 112   ;;  %s389_s20 = smov [#allocation13]   ;;  %vm186_vm9 = vcmask 1048448  }
  0x1b   :  { %117 = vst.msk [vmem:[#allocation3 + $0x20] sm:$0xff] %vm112_vm0, %v383_v0  ;;  %s195_s21 = sshll.u32 %s389_s20, 4  ;;  %s197_s24 = sshll.u32 %s449_s5, 4  ;;  %vm188_vm10 = vcmask 785408   ;;  %s196_s21 = int_to_ptr.vmem [resolvable:$true] %s195_s21  ;;  %s198_s24 = int_to_ptr.hbm [resolvable:$true] %s197_s24 }
  0x1c   :  { %97 = vst.msk [vmem:[#allocation2] sm:$0xff] %vm96_vm1, %v93_v1 }
  0x1d   :  { %120 = vst.msk [vmem:[#allocation3 + $0x8] sm:$0xff] %vm118_vm2, %v95_v3 }
  0x1e   :  { %119 = vst.msk [vmem:[#allocation3] sm:$0xff] %vm118_vm2, %v94_v5 }
  0x20   :  { %127 = vrot.lane.b32.xlu0 %v122_v6, %s385_s4 }
  0x21   :  { %144 = vrot.lane.b32.xlu1 %v95_v3, %s387_s18  ;;  %142 = vrot.lane.b32.xlu2 %v94_v5, %s387_s18 }
  0x28   :  { %107 = vrot.lane.b32.xlu0 %v105_v7, %s385_s4 }
  0x73   :  { %v101_v8 = vpop.permute.xlu2 %100 }
  0x74   :  { %104 = vst.msk [vmem:[#allocation2] sm:$0xff] %vm103_vm3, %v101_v8 }
  0x7b   :  { %v143_v9 = vpop.permute.xlu2 %142 }
  0x7c   :  { %149 = vst.msk [vmem:[#allocation3] sm:$0xff] %vm148_vm4, %v143_v9 }
  0x83   :  { %v152_v19 = vld [vmem:[#allocation3] sm:$0xff] }
  0x8a   :  { %v136_v10 = vpop.permute.xlu0 %135 }
  0x8b   :  { %v126_v11 = vpop.permute.xlu1 %125  ;;  %139 = vst.msk [vmem:[#allocation3 + $0x20] sm:$0xff] %vm138_vm5, %v136_v10 }
  0x8c   :  { %132 = vst.msk [vmem:[#allocation3 + $0x10] sm:$0xff] %vm131_vm6, %v126_v11 }
  0x92   :  { %v128_v12 = vpop.permute.xlu0 %127  ;;  %v156_v13 = vld [vmem:[#allocation3 + $0x20] sm:$0xff] }
  0x93   :  { %v145_v14 = vpop.permute.xlu1 %144  ;;  %133 = vst.msk [vmem:[#allocation3 + $0x18] sm:$0xff] %vm131_vm6, %v128_v12  ;;  %172 = vmatpush.msra.mxu0 %v156_v13  ;;  %v154_v17 = vld [vmem:[#allocation3 + $0x10] sm:$0xff] }
  0x94   :  { %150 = vst.msk [vmem:[#allocation3 + $0x8] sm:$0xff] %vm148_vm4, %v145_v14 }
  0x9a   :  { %v108_v15 = vpop.permute.xlu0 %107  ;;  %v155_v16 = vld [vmem:[#allocation3 + $0x18] sm:$0xff] }
  0x9b   :  { %111 = vst.msk [vmem:[#allocation2] sm:$0xff] %vm110_vm7, %v108_v15  ;;  %173 = vmatpush.msra.mxu0 %v155_v16  ;;  %v153_v18 = vld [vmem:[#allocation3 + $0x8] sm:$0xff] }
  0x9d   :  { %174 = vmatpush.msra.mxu0 %v154_v17 }
  0x9f   :  { %175 = vmatpush.msra.mxu0 %v153_v18 }
  0xa1   :  { %176 = vmatpush.msra.mxu0 %v152_v19 }
  0xa2   :  { %v151_v20 = vld [vmem:[#allocation2] sm:$0xff] }
  0xa3   :  { %209 = vmatmul.msk.f32.vlgmr.msra.gmra.mxu0 %vm157_vm8, %v151_v20 }
 0x120   :  { %v178_v21 = vpop.f32.mrf.mxu0 }
 0x121   :  { %181 = vst.msk [vmem:[#allocation13] sm:$0xff] %vm112_vm0, %v178_v21  ;;  %183 = vrot.lane.b32.xlu1 %v178_v21, %s388_s19 }
 0x193   :  { %v184_v22 = vpop.permute.xlu1 %183 }
 0x194   :  { %187 = vst.msk [vmem:[#allocation13] sm:$0xff] %vm186_vm9, %v184_v22 }
 0x195   :  { %189 = vst.msk [vmem:[#allocation13 + $0x8] sm:$0xff] %vm188_vm10, %v184_v22 }
 0x196   :  { %200 = dma.vmem_to_hbm [thread:$0]  %s196_s21, 256, %s198_s24, [#allocation6]  }
 0x197   :  { %374 = dma.done.wait [#allocation6], 256  }
 0x198   :  { %375 = vsyncadd [#allocation6], 4294967040 }
 0x199   :  { %205 = vsyncpa [#allocation5], 1 }
 0x19a   :  { %206 = vsyncpa [#allocation8], 1 }
 0x19b   :  { %207 = vsyncpa [#allocation11], 1 }
 0x19c   :  { %208 = vsyncpa [#allocation6], 1 }

</bundles_post_ra>
